<compile_context>
chip_gen: v5e
topology: v5e:2x2
jax: 0.10.0
libtpu: 0.0.40
codegen_flags: <defaults>
</compile_context>

<pallas_src>
import jax
import jax.numpy as jnp
from jax.experimental import pallas as pl
from jax.experimental.pallas import tpu as pltpu

HIDDEN = 15                    # fixed by the module (15 qubits)
_INV_PI = 0.3183098861837907   # 1/pi (f32)


def hybrid_kernel(xT_ref, w1_ref, b1_ref, w2_ref, b2_ref, o_ref):
    # xT_ref: (D, TB) bf16 | w1_ref: (15, D) bf16 | b1_ref, w2_ref: (15, 1) f32
    # b2_ref: (1, 1) f32 in SMEM | o_ref: (1, TB) f32
    # fc1 in transposed (lane-dense) orientation: h = W1 @ x^T + b1 -> (15, TB), f32 acc.
    h = jnp.dot(w1_ref[...], xT_ref[...], preferred_element_type=jnp.float32)
    h = jnp.maximum(h + b1_ref[...], 0.0)                               # (15, TB), h >= 0

    # Quantum layer: most-probable bit of RY(theta)|0> is 1 iff cos(theta) < 0.
    # Since h >= 0 (relu), sign(cos h) reduces to a cheap parity test:
    #   cos(h) < 0  <=>  floor(h/pi + 1/2) is odd
    # (mul + add + f2i + and + cmp per element instead of a full cos polynomial).
    k = (h * _INV_PI + 0.5).astype(jnp.int32)      # trunc == floor (argument >= 0.5 > 0)
    bit_is_one = (k & 1) == 1                      # (15, TB) bool

    # fc2 folded in: apply the +/-1 sign directly to the fc2 weight column (VPU select),
    # then a cross-sublane reduce -- no q intermediate, no N=1 MXU matmul.
    signed = jnp.where(bit_is_one, w2_ref[...], -w2_ref[...])           # (15, TB)
    z = jnp.sum(signed, axis=0, keepdims=True) + b2_ref[0, 0]           # (1, TB)

    # sigmoid; approx=True routes the divide to the (otherwise idle) EUP slot.
    o_ref[...] = pl.reciprocal(1.0 + jnp.exp(-z), approx=True)


def _choose_tile_batch(B, D, *, min_grid=2, max_tile=8192):
    """Lane-dense batch tile: a multiple of 128 that
       * grows to 2048-8192 for large B (amortizes ~0.35us per-grid-step overhead),
       * clamps to 128 for tiny B (avoids 64x padding waste),
       * keeps >= `min_grid` grid steps where possible so the "parallel" batch axis
         is sharded across both v7x TensorCores (harmless on single-TC v5e/v6e),
       * caps the double-buffered bf16 (D, tb) x tile at ~8 MiB of VMEM (VMEM is
         never the binding constraint here on any generation)."""
    lanes = 128
    b_lanes = lanes * pl.cdiv(B, lanes)
    cap_vmem = max(lanes, ((8 * 1024 * 1024) // (2 * 2 * max(D, 1))) // lanes * lanes)
    cap = min(max_tile, cap_vmem)
    tb = lanes * pl.cdiv(pl.cdiv(b_lanes, min_grid), lanes)
    return max(lanes, min(cap, tb))


def hybrid_forward(x, w1, b1, w2, b2, *, tile_batch=None):
    """x: (B, D) f32; w1: (15, D); b1: (15,); w2: (1, 15); b2: (1,)  (PyTorch layouts).
    Call under jax.jit so the bf16 cast + pad + transpose below fuse into one HBM pass
    feeding the kernel (eager execution would add extra passes over x)."""
    B, D = x.shape
    H = w1.shape[0]
    tb = tile_batch if tile_batch is not None else _choose_tile_batch(B, D)
    b_pad = tb * pl.cdiv(B, tb)
    num_steps = b_pad // tb

    x_b = x.astype(jnp.bfloat16)
    if b_pad != B:
        x_b = jnp.pad(x_b, ((0, b_pad - B), (0, 0)))
    xT = x_b.T                        # (D, B_pad): batch on the 128-lane axis (lane-dense)

    # tb only stays <=1024 with many grid steps when huge D forces the VMEM cap; deepen
    # the x pipeline there so the per-step DMA is not exposed behind short tile compute.
    x_spec_kwargs = {}
    if tb <= 1024 and num_steps >= 3:
        x_spec_kwargs = dict(pipeline_mode=pl.Buffered(3))

    cost = pl.CostEstimate(
        flops=2 * b_pad * H * D + 8 * b_pad * H,       # fc1 matmul + elementwise chain
        transcendentals=b_pad,                         # exp in the final sigmoid
        bytes_accessed=2 * b_pad * D + 4 * b_pad + 2 * H * D + 4 * (2 * H + 1),
    )

    out = pl.pallas_call(
        hybrid_kernel,
        out_shape=jax.ShapeDtypeStruct((1, b_pad), jnp.float32),
        grid=(num_steps,),
        in_specs=[
            pl.BlockSpec((D, tb), lambda i: (0, i), **x_spec_kwargs),  # x, streamed over batch
            pl.BlockSpec((H, D), lambda i: (0, 0)),             # w1: VMEM-resident
            pl.BlockSpec((H, 1), lambda i: (0, 0)),             # b1 column
            pl.BlockSpec((H, 1), lambda i: (0, 0)),             # w2 column
            pl.BlockSpec(memory_space=pltpu.MemorySpace.SMEM),  # b2 scalar
        ],
        out_specs=pl.BlockSpec((1, tb), lambda i: (0, i)),      # lane-dense output row
        compiler_params=pltpu.CompilerParams(
            dimension_semantics=("parallel",),                  # shard batch across TCs (v7x)
            vmem_limit_bytes=32 * 1024 * 1024,
        ),
        cost_estimate=cost,
    )(
        xT,
        w1.astype(jnp.bfloat16),
        b1.reshape(H, 1).astype(jnp.float32),
        w2.reshape(H, 1).astype(jnp.float32),
        b2.reshape(1, 1).astype(jnp.float32),
    )
    return out[0, :B].reshape(B, 1)


def reference_forward(x, w1, b1, w2, b2):
    # Pure-JAX reference.  Mirrors the kernel numerics: bf16 fc1 inputs (f32 accumulate)
    # and the same parity-based sign(cos h) test, so the hard +/-1 threshold is evaluated
    # on identical values.  Sigmoid is exact here (kernel uses the EUP approx reciprocal;
    # covered by the loosened tolerance in the test).
    h = jnp.dot(x.astype(jnp.bfloat16), w1.astype(jnp.bfloat16).T,
                preferred_element_type=jnp.float32) + b1[None, :]
    h = jnp.maximum(h, 0.0)
    k = (h * _INV_PI + 0.5).astype(jnp.int32)
    q = jnp.where((k & 1) == 1, 1.0, -1.0).astype(jnp.float32)
    z = jnp.sum(q * w2, axis=-1, keepdims=True) + b2[None, :]
    return 1.0 / (1.0 + jnp.exp(-z))


if __name__ == "__main__":
    D = 32  # input feature dim (X_train.shape[1] in the original script)
    key = jax.random.PRNGKey(0)
    kx, k1, k2, k3, k4 = jax.random.split(key, 5)

    # Deterministic parameter init (uniform, like PyTorch Linear), PyTorch layouts.
    bound1 = 1.0 / (D ** 0.5)
    w1 = jax.random.uniform(k1, (HIDDEN, D), jnp.float32, -bound1, bound1)   # fc1.weight
    b1 = jax.random.uniform(k2, (HIDDEN,), jnp.float32, -bound1, bound1)     # fc1.bias
    bound2 = 1.0 / (HIDDEN ** 0.5)
    w2 = jax.random.uniform(k3, (1, HIDDEN), jnp.float32, -bound2, bound2)   # fc2.weight
    b2 = jax.random.uniform(k4, (1,), jnp.float32, -bound2, bound2)          # fc2.bias

    # jit-wrap the whole forward so the cast/pad/transpose pre-pass fuses with the
    # producer side of the kernel instead of making extra eager HBM round-trips.
    fwd = jax.jit(hybrid_forward)

    # B=8: single 128-wide tile (small-batch clamp); B=300: 2-step grid + tail slice.
    for B in (8, 300):
        xb = jax.random.normal(jax.random.fold_in(kx, B), (B, D), dtype=jnp.float32)
        out = jax.block_until_ready(fwd(xb, w1, b1, w2, b2))
        ref = reference_forward(xb, w1, b1, w2, b2)
        assert out.shape == (B, 1)
        # 5e-3 tolerance covers the EUP approximate reciprocal in the final sigmoid;
        # logic errors (wrong quantum sign, dropped bias) move the output far more.
        assert jnp.allclose(out, ref, atol=5e-3, rtol=5e-3)

    print("KERNEL_OK")
</pallas_src>

<mosaic_0001>
module attributes {stable_mosaic.version = 11 : i64} {
  func.func @hybrid_kernel(%arg0: i32, %arg1: memref<32x128xbf16, #tpu.memory_space<vmem>>, %arg2: memref<15x32xbf16, #tpu.memory_space<vmem>>, %arg3: memref<15x1xf32, #tpu.memory_space<vmem>>, %arg4: memref<15x1xf32, #tpu.memory_space<vmem>>, %arg5: memref<1x1xf32, #tpu.memory_space<smem>>, %arg6: memref<1x128xf32, #tpu.memory_space<vmem>>) attributes {dimension_semantics = [#tpu.dimension_semantics<parallel>], iteration_bounds = array<i64: 1>, scalar_prefetch = 0 : i64, scratch_operands = 0 : i64, tpu.core_type = #tpu.core_type<tc>, window_params = [{transform_indices = @transform_0, window_bounds = array<i64: 32, 128>}, {pipeline_mode = #tpu.pipeline_mode<synchronous>, transform_indices = @transform_1, window_bounds = array<i64: 15, 32>}, {pipeline_mode = #tpu.pipeline_mode<synchronous>, transform_indices = @transform_2, window_bounds = array<i64: 15, 1>}, {pipeline_mode = #tpu.pipeline_mode<synchronous>, transform_indices = @transform_3, window_bounds = array<i64: 15, 1>}, {transform_indices = @transform_4, window_bounds = array<i64: 1, 1>}, {transform_indices = @transform_5, window_bounds = array<i64: 1, 128>}]} {
    %c0 = arith.constant 0 : index
    %c0_0 = arith.constant 0 : index
    %0 = vector.load %arg2[%c0, %c0_0] : memref<15x32xbf16, #tpu.memory_space<vmem>>, vector<15x32xbf16>
    %c0_1 = arith.constant 0 : index
    %c0_2 = arith.constant 0 : index
    %1 = vector.load %arg1[%c0_1, %c0_2] : memref<32x128xbf16, #tpu.memory_space<vmem>>, vector<32x128xbf16>
    %cst = arith.constant dense<0.000000e+00> : vector<15x128xf32>
    %2 = tpu.matmul %0, %1, %cst {dimension_numbers = #tpu.dot_dimension_numbers<[1], [0], [0], [1], [0, 0, 1, 1], [], []>} : vector<15x32xbf16>, vector<32x128xbf16>, vector<15x128xf32> -> vector<15x128xf32>
    %c0_3 = arith.constant 0 : index
    %c0_4 = arith.constant 0 : index
    %3 = vector.load %arg3[%c0_3, %c0_4] : memref<15x1xf32, #tpu.memory_space<vmem>>, vector<15x1xf32>
    %4 = vector.broadcast %3 : vector<15x1xf32> to vector<15x128xf32>
    %5 = arith.addf %2, %4 : vector<15x128xf32>
    %cst_5 = arith.constant 0.000000e+00 : f32
    %6 = vector.broadcast %cst_5 : f32 to vector<15x128xf32>
    %7 = arith.maximumf %5, %6 : vector<15x128xf32>
    %cst_6 = arith.constant 0.318309873 : f32
    %8 = vector.broadcast %cst_6 : f32 to vector<15x128xf32>
    %9 = arith.mulf %7, %8 : vector<15x128xf32>
    %cst_7 = arith.constant 5.000000e-01 : f32
    %10 = vector.broadcast %cst_7 : f32 to vector<15x128xf32>
    %11 = arith.addf %9, %10 : vector<15x128xf32>
    %12 = arith.fptosi %11 : vector<15x128xf32> to vector<15x128xi32>
    %c1_i32 = arith.constant 1 : i32
    %13 = vector.broadcast %c1_i32 : i32 to vector<15x128xi32>
    %14 = arith.andi %12, %13 : vector<15x128xi32>
    %c1_i32_8 = arith.constant 1 : i32
    %15 = vector.broadcast %c1_i32_8 : i32 to vector<15x128xi32>
    %16 = arith.cmpi eq, %14, %15 : vector<15x128xi32>
    %c0_9 = arith.constant 0 : index
    %c0_10 = arith.constant 0 : index
    %17 = vector.load %arg4[%c0_9, %c0_10] : memref<15x1xf32, #tpu.memory_space<vmem>>, vector<15x1xf32>
    %c0_11 = arith.constant 0 : index
    %c0_12 = arith.constant 0 : index
    %18 = vector.load %arg4[%c0_11, %c0_12] : memref<15x1xf32, #tpu.memory_space<vmem>>, vector<15x1xf32>
    %cst_13 = arith.constant 0.000000e+00 : f32
    %19 = vector.broadcast %cst_13 : f32 to vector<15x1xf32>
    %20 = arith.subf %19, %18 : vector<15x1xf32>
    %21 = vector.shape_cast %17 : vector<15x1xf32> to vector<15x1xf32>
    %22 = vector.broadcast %21 : vector<15x1xf32> to vector<15x128xf32>
    %23 = vector.shape_cast %20 : vector<15x1xf32> to vector<15x1xf32>
    %24 = vector.broadcast %23 : vector<15x1xf32> to vector<15x128xf32>
    %25 = arith.select %16, %22, %24 : vector<15x128xi1>, vector<15x128xf32>
    %cst_14 = arith.constant dense<0.000000e+00> : vector<128xf32>
    %26 = vector.multi_reduction <add>, %25, %cst_14 [0] : vector<15x128xf32> to vector<128xf32>
    %27 = vector.shape_cast %26 : vector<128xf32> to vector<1x128xf32>
    %c0_15 = arith.constant 0 : index
    %c0_16 = arith.constant 0 : index
    %28 = memref.load %arg5[%c0_15, %c0_16] : memref<1x1xf32, #tpu.memory_space<smem>>
    %29 = vector.broadcast %28 : f32 to vector<1x128xf32>
    %30 = arith.addf %27, %29 : vector<1x128xf32>
    %cst_17 = arith.constant 0.000000e+00 : f32
    %31 = vector.broadcast %cst_17 : f32 to vector<1x128xf32>
    %32 = arith.subf %31, %30 : vector<1x128xf32>
    %33 = math.exp %32 : vector<1x128xf32>
    %cst_18 = arith.constant 1.000000e+00 : f32
    %34 = vector.broadcast %cst_18 : f32 to vector<1x128xf32>
    %35 = arith.addf %34, %33 : vector<1x128xf32>
    %36 = tpu.reciprocal %35 {approx = true} : vector<1x128xf32> -> vector<1x128xf32>
    %c0_19 = arith.constant 0 : index
    %c0_20 = arith.constant 0 : index
    %37 = vector.load %arg6[%c0_19, %c0_20] : memref<1x128xf32, #tpu.memory_space<vmem>>, vector<1x128xf32>
    tpu.vector_store %arg6[%c0_19, %c0_20], %36 {strides = array<i32>} : memref<1x128xf32, #tpu.memory_space<vmem>>, vector<1x128xf32>,
    return
  }
  func.func @transform_0(%arg0: i32) -> (i32, i32) {
    %c0_i32 = arith.constant 0 : i32
    %c0_i32_0 = arith.constant 0 : i32
    return %c0_i32, %arg0 : i32, i32
  }
  func.func @transform_1(%arg0: i32) -> (i32, i32) {
    %c0_i32 = arith.constant 0 : i32
    %c0_i32_0 = arith.constant 0 : i32
    %c0_i32_1 = arith.constant 0 : i32
    return %c0_i32, %c0_i32_0 : i32, i32
  }
  func.func @transform_2(%arg0: i32) -> (i32, i32) {
    %c0_i32 = arith.constant 0 : i32
    %c0_i32_0 = arith.constant 0 : i32
    %c0_i32_1 = arith.constant 0 : i32
    return %c0_i32, %c0_i32_0 : i32, i32
  }
  func.func @transform_3(%arg0: i32) -> (i32, i32) {
    %c0_i32 = arith.constant 0 : i32
    %c0_i32_0 = arith.constant 0 : i32
    %c0_i32_1 = arith.constant 0 : i32
    return %c0_i32, %c0_i32_0 : i32, i32
  }
  func.func @transform_4(%arg0: i32) -> (i32, i32) {
    %c0_i32 = arith.constant 0 : i32
    %c0_i32_0 = arith.constant 0 : i32
    %c0_i32_1 = arith.constant 0 : i32
    return %c0_i32, %c0_i32_0 : i32, i32
  }
  func.func @transform_5(%arg0: i32) -> (i32, i32) {
    %c0_i32 = arith.constant 0 : i32
    %c0_i32_0 = arith.constant 0 : i32
    return %c0_i32, %arg0 : i32, i32
  }
}

</mosaic_0001>

<bundles_post_ra>
// kernel: hybrid_forward.1
= control target key start
LH: loop header
LB: loop body
LE: loop exit
PB: predicated region body
PF: predicated region fallthrough
CT: control target
= control target key end

     0   :  { %v169_v1 = vmov 0   ;;  %vm57_vm0 = vcmask 261120   ;;  %vm113_vm3 = vcmask 1046528   ;;  %s227_s0 = inlined_call_operand.vmem [shape: bf16[32,128], index: 0, kind: input, shape index: {}]   ;;  %s228_s2 = inlined_call_operand.vmem [shape: f32[15,1], index: 2, kind: input, shape index: {}]   ;;  %s229_s3 = inlined_call_operand.vmem [shape: f32[15,1], index: 3, kind: input, shape index: {}]   ;;  %s230_s1 = inlined_call_operand.vmem [shape: bf16[15,32], index: 1, kind: input, shape index: {}]   ;;  %s231_s4 = inlined_call_operand.<no memory space> [shape: f32[1,1], index: 4, kind: input, shape index: {}]   ;;  %s232_s5 = inlined_call_operand.vmem [shape: f32[1,128], index: 5, kind: output, shape index: {}]  }
   0x1   :  { %v150_v0 = vld [vmem:[%s227_s0 + $0x8] sm:$0xff]  ;;  %162 = vset.pattern.permute.xlu0 %v169_v1  ;;  %163 = vset.pattern.permute.xlu1 %v169_v1  ;;  %v149_v4 = vld [vmem:[%s227_s0] sm:$0xff]  ;;  %v123_v45 = vstv %s231_s4 }
   0x2   :  { %v29_v2 = vld [vmem:[%s228_s2 + $0x8] sm:$0x7f]  ;;  %164 = vset.pattern.permute.xlu2 %v169_v1  ;;  %67 = vmatpush.bf16.msra.mxu0 %v150_v0  ;;  %v87_v5 = vld [vmem:[%s229_s3] sm:$0xff] }
   0x3   :  { %v88_v3 = vld [vmem:[%s229_s3 + $0x8] sm:$0x7f]  ;;  %37 = vperm.xlu0 %162, %v29_v2   ;;  %93 = vperm.xlu2 %164, %v87_v5   ;;  %v148_v6 = vld [vmem:[%s230_s1] sm:$0xff]  ;;  %v89_v9 = vsub.f32 0.0, %v87_v5 }
   0x4   :  { %98 = vperm.xlu1 %163, %v88_v3   ;;  %v28_v7 = vld [vmem:[%s228_s2] sm:$0xff]  ;;  %v90_v8 = vsub.f32 0.0, %v88_v3 }
   0x6   :  { %68 = vmatpush.bf16.msra.mxu0 %v149_v4 }
   0x9   :  { %147 = vmatmul.msk.bf16.vlgmr.msra.gmra.mxu0 %vm57_vm0, %v148_v6 }
   0xb   :  { %32 = vperm.xlu0 %162, %v28_v7   ;;  %103 = vperm.xlu2 %164, %v89_v9  }
   0xc   :  { %108 = vperm.xlu1 %163, %v90_v8  }
  0x5d   :  { %v94_v23 = vpop.permute.xlu2 %93 }
  0x65   :  { %v104_v34 = vpop.permute.xlu2 %103 }
  0x75   :  { %v38_v10 = vpop.permute.xlu0 %37 }
  0x76   :  { %v99_v25 = vpop.permute.xlu1 %98 }
  0x7d   :  { %v33_v11 = vpop.permute.xlu0 %32 }
  0x7e   :  { %v109_v35 = vpop.permute.xlu1 %108 }
  0x86   :  { %v70_v12 = vpop.f32.mrf.mxu0 }
  0x87   :  { %v71_v13 = vadd.f32 %v70_v12, %v33_v11 }
  0x89   :  { %v75_v14 = vmax.f32 %v71_v13, 0.0 }
  0x8b   :  { %v77_v15 = vmul.f32 0.31830987, %v75_v14 }
  0x8d   :  { %v79_v16 = vadd.f32 0.5, %v77_v15 }
  0x8e   :  { %v72_v17 = vpop.f32.mrf.mxu0 }
  0x8f   :  { %vm151_vm1 = vcmp.lt.s32.totalorder %v79_v16, 0  ;;  %v152_v18 = vceil.f32 %v79_v16  ;;  %v153_v19 = vfloor.f32 %v79_v16  ;;  %v73_v20 = vadd.f32 %v72_v17, %v38_v10 }
  0x91   :  { %v76_v21 = vmax.f32 %v73_v20, 0.0  ;;  %v154_v22 = vsel %vm151_vm1, %v152_v18, %v153_v19 }
  0x92   :  { %v155_v27 = vcvt.f32.s32 %v154_v22 }
  0x93   :  { %v78_v24 = vmul.f32 0.31830987, %v76_v21 }
  0x94   :  { %v83_v31 = vand.u32 1, %v155_v27 }
  0x95   :  { %v80_v26 = vadd.f32 0.5, %v78_v24 }
  0x96   :  { %vm85_vm4 = vcmp.eq.s32.totalorder %v83_v31, 1 }
  0x97   :  { %vm156_vm2 = vcmp.lt.s32.totalorder %v80_v26, 0  ;;  %v157_v28 = vceil.f32 %v80_v26  ;;  %v158_v29 = vfloor.f32 %v80_v26  ;;  %v111_v38 = vsel %vm85_vm4, %v94_v23, %v104_v34 }
  0x99   :  { %v159_v30 = vsel %vm156_vm2, %v157_v28, %v158_v29 }
  0x9a   :  { %v160_v32 = vcvt.f32.s32 %v159_v30 }
  0x9c   :  { %v84_v33 = vand.u32 1, %v160_v32 }
  0x9e   :  { %vm86_vm5 = vcmp.eq.s32.totalorder %v84_v33, 1 }
  0x9f   :  { %v112_v36 = vsel %vm86_vm5, %v99_v25, %v109_v35 }
  0xa0   :  { %v114_v37 = vsel %vm113_vm3, %v112_v36, 0.0 }
  0xa1   :  { %v115_v39 = vadd.f32 %v114_v37, %v111_v38 }
  0xa3   :  { %v116_v40 = vrot.slane %v115_v39, 4 }
  0xa5   :  { %v117_v41 = vadd.f32 %v116_v40, %v115_v39 }
  0xa7   :  { %v118_v42 = vrot.slane %v117_v41, 2 }
  0xa9   :  { %v119_v43 = vadd.f32 %v118_v42, %v117_v41 }
  0xab   :  { %v120_v44 = vrot.slane %v119_v43, 1 }
  0xad   :  { %v121_v46 = vadd.f32 %v120_v44, %v119_v43 }
  0xaf   :  { %v124_v47 = vadd.f32 %v123_v45, %v121_v46 }
  0xb1   :  { %v125_v48 = vsub.f32 0.0, %v124_v47 }
  0xb3   :  { %v126_v49 = vmul.f32 1.442695, %v125_v48 }
  0xb5   :  { %165 = vpow2.f32 %v126_v49 }
  0xbb   :  { %v166_v50 = vpop.eup %165 }
  0xbc   :  { %v128_v51 = vadd.f32 1.0, %v166_v50 }
  0xbe   :  { %167 = vrcp.f32 %v128_v51 }
  0xc4   :  { %v168_v52 = vpop.eup %167 }
  0xc5   :  { %130 = vst [vmem:[%s232_s5] sm:$0x1] %v168_v52 }

</bundles_post_ra>
